<compile_context>
chip_gen: v7x
topology: tpu7x:2x2x1
jax: 0.10.0
libtpu: 0.0.40
codegen_flags: <defaults>
</compile_context>

<pallas_src>
import functools

import jax
import jax.numpy as jnp
from jax import lax
from jax.experimental import pallas as pl
from jax.experimental.pallas import tpu as pltpu

LANE = 128
SUBLANE = 8
_NEG_FILL = -1e30  # finite "-inf": keeps t*x == 0 (not NaN) on masked slots


def _soft_ce_tile_kernel(x_ref, t_ref, m_ref, l_ref, sumt_ref, sumtx_ref, *,
                         rows_per_tile, total_rows, mask_last):
    """Per-(batch-block, row-tile) partials for streaming soft cross-entropy.

    x_ref/t_ref: (bt, st, 128) tile of the lane-folded (B, rows, 128) inputs.
    Outputs (each (bt, 1, 1)): tile max `m`, tile sum(exp(x - m)) `l`,
    tile sum(t), tile sum(t*x).  A tiny combine outside the kernel merges the
    per-tile partials into the exact per-row logsumexp / loss.
    """

    def _rmax(v):  # (bt, st, 128) -> (bt, 1, 1): sublane reduce first, lanes last
        return jnp.max(jnp.max(v, axis=1, keepdims=True), axis=2, keepdims=True)

    def _rsum(v):
        return jnp.sum(jnp.sum(v, axis=1, keepdims=True), axis=2, keepdims=True)

    def _emit(x, t):
        m = _rmax(x)
        m_ref[...] = m
        l_ref[...] = _rsum(jnp.exp(x - m))
        sumt_ref[...] = _rsum(t)
        sumtx_ref[...] = _rsum(t * x)

    # TODO(synk): on v6e/v7x a bf16 input could stay bf16 through the
    # subtract/exp/multiply (f32 only for the partials); kept in f32 here for
    # accuracy and v5e compatibility.
    xf = x_ref[...].astype(jnp.float32)
    tf = t_ref[...].astype(jnp.float32)

    if mask_last:
        # Only the final row-tile can overrun `total_rows`; mask it there and
        # keep the hot interior tiles mask-free.
        k = pl.program_id(1)
        last = pl.num_programs(1) - 1

        @pl.when(k == last)
        def _():
            rid = k * rows_per_tile + lax.broadcasted_iota(
                jnp.int32, (1, rows_per_tile, LANE), 1)
            keep = rid < total_rows
            _emit(jnp.where(keep, xf, _NEG_FILL), jnp.where(keep, tf, 0.0))

        @pl.when(k != last)
        def _():
            _emit(xf, tf)
    else:
        _emit(xf, tf)


def _pick_tiling(B, rows, x_itemsize, t_itemsize):
    """Choose (bt, st, vmem_limit_bytes) for the (B, rows, 128) fold."""
    # Generation-aware VMEM capacity (v5e/v6e report 128 MiB, v7x 64 MiB / TC).
    try:
        vmem_cap = int(pltpu.get_tpu_info().vmem_capacity_bytes)
    except Exception:  # conservative fallback (v7x per-TC physical)
        vmem_cap = 64 * 1024 * 1024
    tile_budget = max(2 * 1024 * 1024, min(vmem_cap // 5, 24 * 1024 * 1024))

    # Bytes per block element: 2 pipeline buffers per input stream, plus the
    # f32 working slabs Mosaic may materialize in-kernel (casts, exp, t*x).
    f32_slabs = 2 + int(x_itemsize < 4) + int(t_itemsize < 4)
    per_elem = 2 * (x_itemsize + t_itemsize) + 4 * f32_slabs
    max_block_rows = max(1, (tile_budget // per_elem) // LANE)

    # Sublane packing of the streamed dtype: 8 f32, 16 bf16, 32 int8/fp8.
    pack = max(SUBLANE, 32 // max(1, min(x_itemsize, t_itemsize)))

    if rows >= max_block_rows:
        # Big feature axis: one batch row per block, tile the folded row axis.
        bt = 1
        st = max(pack, (max_block_rows // pack) * pack)
    else:
        # Small feature axis: whole row axis per block; group batch rows to get
        # decent-sized DMAs, preferring an exact divisor of B (no over-scan)
        # and keeping >= 2 batch blocks so megacore still has work to split.
        st = rows
        bt = 1
        if B > 1:
            goal_rows = min(max_block_rows, 2048)
            bt_cap = max(1, min(B // 2, goal_rows // max(1, rows)))
            for cand in range(bt_cap, 1, -1):
                if B % cand == 0:
                    bt = cand
                    break
            if bt == 1 and bt_cap > 1 and B > 64:
                bt = bt_cap  # awkwardly-factored large B: <=bt/B over-scan waste

    vmem_limit = int(min(vmem_cap * 3 // 4, 2 * tile_budget + (8 << 20)))
    return bt, st, vmem_limit


def cross_entropy_loss_soft(inp, target, ignore_index=None, weight=None):
    """Pallas equivalent of CrossEntropyLossSoft.forward (defaults: no
    ignore_index, no weight). Returns the scalar mean soft cross-entropy."""
    # TODO(synk): ignore_index / weight branches of the reference module are
    # not wired up (module defaults are None); only the base path is in-kernel.
    assert ignore_index is None and weight is None

    B = inp.shape[0]
    x2d = inp.reshape(B, -1)
    t2d = target.reshape(B, -1)
    D = x2d.shape[1]

    rows = pl.cdiv(D, LANE)
    if rows * LANE != D:
        # TODO(synk): ragged D still needs this one (<128-column) pad so the
        # lane-packed fold is a free reshape; padded slots are exact no-ops
        # (t=0, x=-1e30).  Lane-aligned D takes the zero-copy path.
        d_pad = rows * LANE - D
        x2d = jnp.pad(x2d, ((0, 0), (0, d_pad)), constant_values=_NEG_FILL)
        t2d = jnp.pad(t2d, ((0, 0), (0, d_pad)), constant_values=0)
    x3 = x2d.reshape(B, rows, LANE)
    t3 = t2d.reshape(B, rows, LANE)

    bt, st, vmem_limit = _pick_tiling(B, rows,
                                      jnp.dtype(x3.dtype).itemsize,
                                      jnp.dtype(t3.dtype).itemsize)
    num_b = pl.cdiv(B, bt)     # last batch block may over-scan; its OOB output
                               # rows are dropped by Pallas (per-row reductions
                               # keep garbage confined to those rows).
    num_k = pl.cdiv(rows, st)  # row tiles per batch row
    mask_last = (num_k * st != rows)

    kernel = functools.partial(_soft_ce_tile_kernel, rows_per_tile=st,
                               total_rows=rows, mask_last=mask_last)

    part_shape = jax.ShapeDtypeStruct((B, num_k, 1), jnp.float32)
    in_spec = pl.BlockSpec((bt, st, LANE), lambda b, k: (b, k, 0))
    out_spec = pl.BlockSpec((bt, 1, 1), lambda b, k: (b, k, 0))

    m_p, l_p, sumt_p, sumtx_p = pl.pallas_call(
        kernel,
        out_shape=(part_shape,) * 4,
        grid_spec=pltpu.PrefetchScalarGridSpec(
            num_scalar_prefetch=0,
            grid=(num_b, num_k),
            in_specs=[in_spec, in_spec],
            out_specs=[out_spec, out_spec, out_spec, out_spec],
        ),
        compiler_params=pltpu.CompilerParams(
            dimension_semantics=("parallel", "parallel"),
            vmem_limit_bytes=vmem_limit,
        ),
    )(x3, t3)

    # Tiny O(B * num_k) combine of the per-tile partials (plain JAX):
    #   lse_b = max_k m + log(sum_k l * exp(m - max_k m))
    #   loss_b = lse_b * sum(t) - sum(t*x)
    m_p, l_p, sumt_p, sumtx_p = (a[..., 0] for a in (m_p, l_p, sumt_p, sumtx_p))
    row_max = jnp.max(m_p, axis=1)                                    # (B,)
    sum_exp = jnp.sum(l_p * jnp.exp(m_p - row_max[:, None]), axis=1)  # (B,)
    lse = row_max + jnp.log(sum_exp)                                  # (B,)
    loss_rows = lse * jnp.sum(sumt_p, axis=1) - jnp.sum(sumtx_p, axis=1)
    return jnp.mean(loss_rows)


def _reference(inp, target):
    B = inp.shape[0]
    x = inp.reshape(B, -1).astype(jnp.float32)
    t = target.reshape(B, -1).astype(jnp.float32)
    logprobs = jax.nn.log_softmax(x, axis=1)
    return jnp.mean(-jnp.sum(t * logprobs, axis=1))


if __name__ == "__main__":
    key = jax.random.PRNGKey(0)
    k1, k2 = jax.random.split(key)

    # input: (batch, C, H, W) = (2, 4, 16, 16); target: same shape, each row a
    # valid distribution over the flattened C*H*W axis.
    x = jax.random.normal(k1, (2, 4, 16, 16), dtype=jnp.float32)
    tgt_logits = jax.random.normal(k2, (2, 4 * 16 * 16), dtype=jnp.float32)
    tgt = jax.nn.softmax(tgt_logits, axis=1).reshape(2, 4, 16, 16)

    loss = cross_entropy_loss_soft(x, tgt)
    loss = jax.block_until_ready(loss)

    ref = _reference(x, tgt)
    assert jnp.allclose(loss, ref, atol=1e-5, rtol=1e-5), (loss, ref)
    print("KERNEL_OK")
</pallas_src>

<mosaic_0001>
module attributes {stable_mosaic.version = 11 : i64} {
  func.func @_soft_ce_tile_kernel(%arg0: i32, %arg1: i32, %arg2: memref<1x8x128xf32, #tpu.memory_space<vmem>>, %arg3: memref<1x8x128xf32, #tpu.memory_space<vmem>>, %arg4: memref<1x1x1xf32, #tpu.memory_space<vmem>>, %arg5: memref<1x1x1xf32, #tpu.memory_space<vmem>>, %arg6: memref<1x1x1xf32, #tpu.memory_space<vmem>>, %arg7: memref<1x1x1xf32, #tpu.memory_space<vmem>>) attributes {dimension_semantics = [#tpu.dimension_semantics<parallel>, #tpu.dimension_semantics<parallel>], iteration_bounds = array<i64: 2, 1>, scalar_prefetch = 0 : i64, scratch_operands = 0 : i64, tpu.core_type = #tpu.core_type<tc>, window_params = [{transform_indices = @transform_0, window_bounds = array<i64: 1, 8, 128>}, {transform_indices = @transform_1, window_bounds = array<i64: 1, 8, 128>}, {transform_indices = @transform_2, window_bounds = array<i64: 1, 1, 1>}, {transform_indices = @transform_3, window_bounds = array<i64: 1, 1, 1>}, {transform_indices = @transform_4, window_bounds = array<i64: 1, 1, 1>}, {transform_indices = @transform_5, window_bounds = array<i64: 1, 1, 1>}]} {
    %c0 = arith.constant 0 : index
    %c0_0 = arith.constant 0 : index
    %c0_1 = arith.constant 0 : index
    %0 = vector.load %arg2[%c0, %c0_0, %c0_1] : memref<1x8x128xf32, #tpu.memory_space<vmem>>, vector<1x8x128xf32>
    %c0_2 = arith.constant 0 : index
    %c0_3 = arith.constant 0 : index
    %c0_4 = arith.constant 0 : index
    %1 = vector.load %arg3[%c0_2, %c0_3, %c0_4] : memref<1x8x128xf32, #tpu.memory_space<vmem>>, vector<1x8x128xf32>
    %cst = arith.constant dense<0xFF800000> : vector<1x128xf32>
    %2 = vector.multi_reduction <maximumf>, %0, %cst [1] : vector<1x8x128xf32> to vector<1x128xf32>
    %3 = vector.shape_cast %2 : vector<1x128xf32> to vector<1x1x128xf32>
    %cst_5 = arith.constant dense<0xFF800000> : vector<1x1xf32>
    %4 = vector.multi_reduction <maximumf>, %3, %cst_5 [2] : vector<1x1x128xf32> to vector<1x1xf32>
    %5 = vector.shape_cast %4 : vector<1x1xf32> to vector<1x1x1xf32>
    %c0_6 = arith.constant 0 : index
    %c0_7 = arith.constant 0 : index
    %c0_8 = arith.constant 0 : index
    %6 = vector.load %arg4[%c0_6, %c0_7, %c0_8] : memref<1x1x1xf32, #tpu.memory_space<vmem>>, vector<1x1x1xf32>
    tpu.vector_store %arg4[%c0_6, %c0_7, %c0_8], %5 {strides = array<i32>} : memref<1x1x1xf32, #tpu.memory_space<vmem>>, vector<1x1x1xf32>,
    %7 = vector.broadcast %5 : vector<1x1x1xf32> to vector<1x8x128xf32>
    %8 = arith.subf %0, %7 : vector<1x8x128xf32>
    %9 = math.exp %8 : vector<1x8x128xf32>
    %cst_9 = arith.constant dense<0.000000e+00> : vector<1x128xf32>
    %10 = vector.multi_reduction <add>, %9, %cst_9 [1] : vector<1x8x128xf32> to vector<1x128xf32>
    %11 = vector.shape_cast %10 : vector<1x128xf32> to vector<1x1x128xf32>
    %cst_10 = arith.constant dense<0.000000e+00> : vector<1x1xf32>
    %12 = vector.multi_reduction <add>, %11, %cst_10 [2] : vector<1x1x128xf32> to vector<1x1xf32>
    %13 = vector.shape_cast %12 : vector<1x1xf32> to vector<1x1x1xf32>
    %c0_11 = arith.constant 0 : index
    %c0_12 = arith.constant 0 : index
    %c0_13 = arith.constant 0 : index
    %14 = vector.load %arg5[%c0_11, %c0_12, %c0_13] : memref<1x1x1xf32, #tpu.memory_space<vmem>>, vector<1x1x1xf32>
    tpu.vector_store %arg5[%c0_11, %c0_12, %c0_13], %13 {strides = array<i32>} : memref<1x1x1xf32, #tpu.memory_space<vmem>>, vector<1x1x1xf32>,
    %cst_14 = arith.constant dense<0.000000e+00> : vector<1x128xf32>
    %15 = vector.multi_reduction <add>, %1, %cst_14 [1] : vector<1x8x128xf32> to vector<1x128xf32>
    %16 = vector.shape_cast %15 : vector<1x128xf32> to vector<1x1x128xf32>
    %cst_15 = arith.constant dense<0.000000e+00> : vector<1x1xf32>
    %17 = vector.multi_reduction <add>, %16, %cst_15 [2] : vector<1x1x128xf32> to vector<1x1xf32>
    %18 = vector.shape_cast %17 : vector<1x1xf32> to vector<1x1x1xf32>
    %c0_16 = arith.constant 0 : index
    %c0_17 = arith.constant 0 : index
    %c0_18 = arith.constant 0 : index
    %19 = vector.load %arg6[%c0_16, %c0_17, %c0_18] : memref<1x1x1xf32, #tpu.memory_space<vmem>>, vector<1x1x1xf32>
    tpu.vector_store %arg6[%c0_16, %c0_17, %c0_18], %18 {strides = array<i32>} : memref<1x1x1xf32, #tpu.memory_space<vmem>>, vector<1x1x1xf32>,
    %20 = arith.mulf %1, %0 : vector<1x8x128xf32>
    %cst_19 = arith.constant dense<0.000000e+00> : vector<1x128xf32>
    %21 = vector.multi_reduction <add>, %20, %cst_19 [1] : vector<1x8x128xf32> to vector<1x128xf32>
    %22 = vector.shape_cast %21 : vector<1x128xf32> to vector<1x1x128xf32>
    %cst_20 = arith.constant dense<0.000000e+00> : vector<1x1xf32>
    %23 = vector.multi_reduction <add>, %22, %cst_20 [2] : vector<1x1x128xf32> to vector<1x1xf32>
    %24 = vector.shape_cast %23 : vector<1x1xf32> to vector<1x1x1xf32>
    %c0_21 = arith.constant 0 : index
    %c0_22 = arith.constant 0 : index
    %c0_23 = arith.constant 0 : index
    %25 = vector.load %arg7[%c0_21, %c0_22, %c0_23] : memref<1x1x1xf32, #tpu.memory_space<vmem>>, vector<1x1x1xf32>
    tpu.vector_store %arg7[%c0_21, %c0_22, %c0_23], %24 {strides = array<i32>} : memref<1x1x1xf32, #tpu.memory_space<vmem>>, vector<1x1x1xf32>,
    return
  }
  func.func @transform_0(%arg0: i32, %arg1: i32) -> (i32, i32, i32) {
    %c0_i32 = arith.constant 0 : i32
    %c0_i32_0 = arith.constant 0 : i32
    return %arg0, %arg1, %c0_i32 : i32, i32, i32
  }
  func.func @transform_1(%arg0: i32, %arg1: i32) -> (i32, i32, i32) {
    %c0_i32 = arith.constant 0 : i32
    %c0_i32_0 = arith.constant 0 : i32
    return %arg0, %arg1, %c0_i32 : i32, i32, i32
  }
  func.func @transform_2(%arg0: i32, %arg1: i32) -> (i32, i32, i32) {
    %c0_i32 = arith.constant 0 : i32
    %c0_i32_0 = arith.constant 0 : i32
    return %arg0, %arg1, %c0_i32 : i32, i32, i32
  }
  func.func @transform_3(%arg0: i32, %arg1: i32) -> (i32, i32, i32) {
    %c0_i32 = arith.constant 0 : i32
    %c0_i32_0 = arith.constant 0 : i32
    return %arg0, %arg1, %c0_i32 : i32, i32, i32
  }
  func.func @transform_4(%arg0: i32, %arg1: i32) -> (i32, i32, i32) {
    %c0_i32 = arith.constant 0 : i32
    %c0_i32_0 = arith.constant 0 : i32
    return %arg0, %arg1, %c0_i32 : i32, i32, i32
  }
  func.func @transform_5(%arg0: i32, %arg1: i32) -> (i32, i32, i32) {
    %c0_i32 = arith.constant 0 : i32
    %c0_i32_0 = arith.constant 0 : i32
    return %arg0, %arg1, %c0_i32 : i32, i32, i32
  }
}

</mosaic_0001>

<bundles_post_ra>
// kernel: tpu_custom_call.1
= control target key start
LH: loop header
LB: loop body
LE: loop exit
PB: predicated region body
PF: predicated region fallthrough
CT: control target
= control target key end

     0   :  { %11 = vsyncpa [#allocation3], 0  ;;  %s1008_s0 = inlined_call_operand.hbm [shape: f32[2,8,128], index: 0, kind: input, shape index: {}]   ;;  %s1009_s1 = inlined_call_operand.hbm [shape: f32[2,8,128], index: 1, kind: input, shape index: {}]   ;;  %s1010_s2 = inlined_call_operand.vmem [shape: f32[2,1,1], index: 2, kind: output, shape index: {0}]   ;;  %s1011_s3 = inlined_call_operand.vmem [shape: f32[2,1,1], index: 3, kind: output, shape index: {1}]   ;;  %s1012_s4 = inlined_call_operand.vmem [shape: f32[2,1,1], index: 4, kind: output, shape index: {2}]   ;;  %s1013_s5 = inlined_call_operand.vmem [shape: f32[2,1,1], index: 5, kind: output, shape index: {3}]  }
   0x1   :  { %13 = vsyncpa [#allocation3 + $0x1], 0 }
   0x2   :  { %14 = vsyncpa [#allocation5], 0 }
   0x3   :  { %16 = vsyncpa [#allocation5 + $0x1], 0  ;;  %s823_s18 = smov 0   ;;  %s825_s19 = smov 0  }
   0x4   :  { %s827_s20 = smov 0   ;;  %s829_s21 = smov 0  }
   0x5   :  { %s831_s22 = smov 0   ;;  %s833_s23 = smov 0  }
   0x6 LB: > { %s600_s24 = sadd.s32 4294967295, %s789_s23   ;;  %s34_s25 = sadd.s32 1, %s785_s22  ;;  %s789_s23 = sphi %s833_s23, %s22_s23   ;;  %s785_s22 = sphi %s831_s22, %s1027_s22   ;;  %s781_s21 = sphi %s829_s21, %s1026_s21   ;;  %s777_s20 = sphi %s827_s20, %s1025_s20   ;;  %s773_s19 = sphi %s825_s19, %s1024_s19   ;;  %s769_s18 = sphi %s823_s18, %s1023_s18  }
   0x7   : > { %p36_p0 = scmp.ge.s32.totalorder %s34_s25, 2  ;;  %s43_s26 = sadd.s32 1, %s777_s20 }
   0x8   : > { %p50_p1 = scmp.ne.s32.totalorder %s777_s20, %s773_s19  ;;  %p51_p2 = scmp.eq.s32.totalorder %s789_s23, 0 }
   0x9   : > { %s1029_s25 = smov (%p36_p0, %s34_s25), 0  ;;  %p56_p4 = scmp.ne.s32.totalorder %s773_s19, %s769_s18 }
   0xa   : > { %p859_p3 = por %p51_p2, %p50_p1  ;;  %s38_s28 = ssub.s32 %s785_s22, %s1029_s25 }
   0xb   : > { %p57_p5 = scmp.eq.s32.totalorder %s600_s24, 0  ;;  %p41_p6 = scmp.eq.s32.totalorder %s38_s28, 0 }
   0xc   : > { %p624_p8 = scmp.lt.s32.totalorder %s789_s23, 2  ;;  %s875_s6 = sand.u32 1, %s777_s20  }
   0xd   : > { %p866_p7 = por %p57_p5, %p56_p4  ;;  %s605_s7 = sshll.u32 %s785_s22, 7 }
   0xe   : > { %s872_s30 = scalar_select %p41_p6, %s777_s20, %s43_s26  }
   0xf   : > { %s1016_s29 = scalar_select %p866_p7, 1, 0 }
  0x10   : > { %s604_s8 = sshll.u32 %s875_s6, 3  ;;  %s884_s11 = scalar_lea.hbm %s1008_s0, %s605_s7 }
  0x11   : > { %s224_s12 = scalar_lea.vmem [#allocation2], %s604_s8  ;;  %p890_p9 = pnand %p624_p8, %p859_p3 }
  0x12   : > { %s232_s13 = sshll.u32 %s224_s12, 4  ;;  %s221_s15 = scalar_lea.sflag [#allocation3], %s875_s6  ;;  %s894_s13 = int_to_ptr.vmem [resolvable:$true] %s232_s13 }
  0x13   : > { %s675_s16 = scalar_lea.hbm %s884_s11, 128  ;;  %p677_p13 = pneg %p890_p9 }
  0x14   : > { %p676_p12 = scmp.ne.s32.totalorder %s884_s11, %s675_s16  ;;  %s680_s24 = scalar_lea.hbm %s1008_s0, 256 }
  0x15   : > { %p681_p2 = scmp.lt.u32.totalorder %s884_s11, %s1008_s0  ;;  %p682_p3 = scmp.lt.u32.totalorder %s680_s24, %s675_s16 }
  0x16   : > { %p678_p0 = pnand %p677_p13, %p676_p12  ;;  %p684_p5 = scmp.lt.u32.totalorder %s675_s16, %s884_s11 }
  0x17   : > { %p683_p4 = por %p682_p3, %p681_p2 }
  0x18   : > { %p679_p1 = pneg %p678_p0 }
  0x19   : > { %p685_p6 = por %p684_p5, %p683_p4 }
  0x1b   : > { %p686_p8 = pnand %p685_p6, %p679_p1 }
  0x1d   : > { %689 = shalt.err (!%p686_p8)
}
  0x1e   : > { %s690_s28 = scalar_lea.vmem %s894_s13, 128  ;;  %s791_s9 = smov [#allocation2]  }
  0x1f   : > { %p691_p12 = scmp.ne.s32.totalorder %s894_s13, %s690_s28  ;;  %s695_s10 = sshll.u32 %s791_s9, 4  ;;  %s696_s10 = int_to_ptr.vmem [resolvable:$false] %s695_s10 }
  0x20   : > { %s697_s12 = scalar_lea.vmem %s696_s10, 256  ;;  %p698_p11 = scmp.lt.s32.totalorder %s894_s13, %s696_s10 }
  0x21   : > { %p693_p0 = pnand %p691_p12, %p677_p13  ;;  %p699_p2 = scmp.lt.s32.totalorder %s697_s12, %s690_s28 }
  0x23   : > { %p694_p10 = pneg %p693_p0  ;;  %p700_p3 = por %p699_p2, %p698_p11 }
  0x25   : > { %p701_p4 = pnand %p700_p3, %p694_p10 }
  0x27   : > { %704 = shalt.err (!%p701_p4)
}
  0x28   : > { %620 = dma.hbm_to_vmem [thread:$0]  (!%p890_p9), %s884_s11, 128, %s894_s13, %s221_s15  }
  0x29   : > { %p1018_p1 = scmp.lt.s32.totalorder %s789_s23, 3  ;;  %p1019_p5 = scmp.ge.s32.totalorder %s789_s23, 1 }
  0x2a   : > { %s937_s24 = scalar_lea.hbm %s1009_s1, %s605_s7  ;;  %s243_s26 = scalar_lea.vmem [#allocation4], %s604_s8 }
  0x2b   : > { %p928_p6 = pnand %p1019_p5, %p1018_p1  ;;  %s251_s27 = sshll.u32 %s243_s26, 4  ;;  %s252_s27 = int_to_ptr.vmem [resolvable:$true] %s251_s27 }
  0x2c   : > { %s240_s11 = scalar_lea.sflag [#allocation5], %s875_s6  ;;  %s705_s13 = scalar_lea.hbm %s937_s24, 128 }
  0x2d   : > { %s1020_s16 = scalar_select %p928_p6, 1, 0 }
  0x2e   : > { %p706_p10 = scmp.ne.s32.totalorder %s937_s24, %s705_s13  ;;  %s710_s7 = scalar_lea.hbm %s1009_s1, 256 }
  0x2f   : > { %p711_p12 = scmp.lt.u32.totalorder %s937_s24, %s1009_s1  ;;  %p712_p0 = scmp.lt.u32.totalorder %s710_s7, %s705_s13 }
  0x30   : > { %p708_p11 = pnand %p706_p10, %p677_p13  ;;  %p714_p3 = scmp.lt.u32.totalorder %s705_s13, %s937_s24 }
  0x31   : > { %p713_p2 = por %p712_p0, %p711_p12 }
  0x32   : > { %p709_p8 = pneg %p708_p11 }
  0x33   : > { %p715_p4 = por %p714_p3, %p713_p2 }
  0x35   : > { %p716_p1 = pnand %p715_p4, %p709_p8 }
  0x37   : > { %719 = shalt.err (!%p716_p1)
}
  0x38   : > { %s720_s6 = scalar_lea.vmem %s252_s27, 128  ;;  %s792_s8 = smov [#allocation4]  }
  0x39   : > { %p721_p5 = scmp.ne.s32.totalorder %s252_s27, %s720_s6  ;;  %s725_s12 = sshll.u32 %s792_s8, 4  ;;  %s726_s12 = int_to_ptr.vmem [resolvable:$false] %s725_s12 }
  0x3a   : > { %s727_s17 = scalar_lea.vmem %s726_s12, 256  ;;  %p728_p7 = scmp.lt.s32.totalorder %s252_s27, %s726_s12 }
  0x3b   : > { %p723_p10 = pnand %p721_p5, %p677_p13  ;;  %p729_p6 = scmp.lt.s32.totalorder %s727_s17, %s720_s6 }
  0x3d   : > { %p724_p11 = pneg %p723_p10  ;;  %p730_p0 = por %p729_p6, %p728_p7 }
  0x3f   : > { %p731_p12 = pnand %p730_p0, %p724_p11 }
  0x41   : > { %734 = shalt.err (!%p731_p12)
}
  0x42   : > { %623 = dma.hbm_to_vmem [thread:$0]  (!%p890_p9), %s937_s24, 128, %s252_s27, %s240_s11  }
  0x43   : > { %p1021_p8 = scmp.ne.s32.totalorder %s1020_s16, 0 }
  0x44   : > { %s262_s18 = sand.u32 (!%p1021_p8), 1, %s773_s19   ;;  %p1022_p13 = scmp.ne.s32.totalorder (!%p1021_p8), %s1016_s29, 0 }
  0x45   : > { %260 = sbr.rel (%p1021_p8) target bundleno = 404 (0x194), region = 28  ;;  %s609_s26 = sshll.u32 (!%p1021_p8), %s262_s18, 3 }
  0x46   : > { %s263_s13 = scalar_lea.sflag (!%p1021_p8), [#allocation3], %s262_s18  ;;  %s266_s15 = scalar_lea.vmem (!%p1021_p8), [#allocation2], %s609_s26 }
  0x4c   : > { %760 = dma.done.wait (%p1022_p13), %s263_s13, 128  }
  0x4d   : > { %762 = vsyncadd (%p1022_p13), %s263_s13, 4294967168  ;;  %s272_s28 = scalar_lea.sflag [#allocation5], %s262_s18  ;;  %s275_s7 = scalar_lea.vmem [#allocation4], %s609_s26 }
  0x4e   : > { %764 = dma.done.wait (%p1022_p13), %s272_s28, 128  }
  0x4f   : > { %766 = vsyncadd (%p1022_p13), %s272_s28, 4294967168  ;;  %v350_v0 = vld [vmem:[%s266_s15] sm:$0xff]  ;;  %v351_v7 = vld [vmem:[%s275_s7] sm:$0xff]  ;;  %p326_p7 = scmp.lt.s32.totalorder %s781_s21, 1  ;;  %vm360_vm0 = vcmask 0  }
  0x50   : > { %v352_v1 = vrot.slane %v350_v0, 4  ;;  %v374_v8 = vrot.slane %v351_v7, 4  ;;  %v383_v9 = vmul.f32 %v351_v7, %v350_v0 }
  0x51   : > { %s1031_s21 = smov (!%p326_p7, %s781_s21), 1 }
  0x52   : > { %v353_v2 = vmax.f32 %v350_v0, %v352_v1  ;;  %v375_v10 = vadd.f32 %v374_v8, %v351_v7  ;;  %v384_v11 = vrot.slane %v383_v9, 4  ;;  %s331_s16 = scalar_lea.vmem %s1010_s2, %s1031_s21  ;;  %s343_s11 = scalar_lea.vmem %s1012_s4, %s1031_s21 }
  0x53   : > { %s349_s6 = scalar_lea.vmem %s1013_s5, %s1031_s21  ;;  %s337_s17 = scalar_lea.vmem %s1011_s3, %s1031_s21 }
  0x54   : > { %v354_v3 = vrot.slane %v353_v2, 2  ;;  %v376_v12 = vrot.slane %v375_v10, 2  ;;  %v385_v13 = vadd.f32 %v384_v11, %v383_v9 }
  0x56   : > { %v355_v4 = vmax.f32 %v353_v2, %v354_v3  ;;  %v377_v14 = vadd.f32 %v376_v12, %v375_v10  ;;  %v386_v15 = vrot.slane %v385_v13, 2 }
  0x58   : > { %v356_v5 = vrot.slane %v355_v4, 1  ;;  %v378_v16 = vrot.slane %v377_v14, 1  ;;  %v387_v17 = vadd.f32 %v386_v15, %v385_v13 }
  0x5a   : > { %v357_v6 = vmax.f32 %v355_v4, %v356_v5  ;;  %v379_v18 = vadd.f32 %v378_v16, %v377_v14  ;;  %v388_v19 = vrot.slane %v387_v17, 1 }
  0x5c   : > { %358 = vmax.xlane.f32.xlu0 %v357_v6  ;;  %380 = vadd.xlane.f32.xlu1 %v379_v18  ;;  %v389_v20 = vadd.f32 %v388_v19, %v387_v17 }
  0x60   : > { %390 = vadd.xlane.f32.xlu1 %v389_v20 }
  0xe9   : > { %v359_v21 = vpop.xlane.xlu0 %358  ;;  %v381_v31 = vpop.xlane.xlu1 %380 }
  0xea   : > { %361 = vst.msk [vmem:[%s331_s16] sm:$0x1] %vm360_vm0, %v359_v21  ;;  %v362_v22 = vsub.f32 %v350_v0, %v359_v21  ;;  %382 = vst.msk [vmem:[%s343_s11] sm:$0x1] %vm360_vm0, %v381_v31 }
  0xec   : > { %v363_v23 = vmul.f32 1.442695, %v362_v22 }
  0xed   : > { %v391_v32 = vpop.xlane.xlu1 %390 }
  0xee   : > { %673 = vpow2.f32 %v363_v23  ;;  %392 = vst.msk [vmem:[%s349_s6] sm:$0x1] %vm360_vm0, %v391_v32 }
  0xf8   : > { %v674_v24 = vpop.eup %673 }
  0xf9   : > { %v365_v25 = vrot.slane %v674_v24, 4 }
  0xfb   : > { %v366_v26 = vadd.f32 %v674_v24, %v365_v25 }
  0xfd   : > { %v367_v27 = vrot.slane %v366_v26, 2 }
  0xff   : > { %v368_v28 = vadd.f32 %v367_v27, %v366_v26 }
 0x101   : > { %v369_v29 = vrot.slane %v368_v28, 1 }
 0x103   : > { %v370_v30 = vadd.f32 %v369_v29, %v368_v28 }
 0x105   : > { %371 = vadd.xlane.f32.xlu0 %v370_v30 }
 0x192   : > { %v372_v33 = vpop.xlane.xlu0 %371 }
 0x193   : > { %373 = vst.msk [vmem:[%s337_s17] sm:$0x1] %vm360_vm0, %v372_v33 }
 0x194 PF: > { %s22_s23 = sadd.s32 1, %s789_s23   ;;  %s1023_s18 = smov %s773_s19 }
 0x195   : > { %p19_p9 = scmp.ge.s32.totalorder %s22_s23, 4   ;;  %s1024_s19 = smov %s777_s20 }
 0x196   : > { %s1025_s20 = smov %s872_s30  ;;  %s1026_s21 = smov %s785_s22 }
 0x197   : > { %s1027_s22 = smov %s1029_s25  ;;  %21 = sbr.rel (!%p19_p9) target bundleno = 6 (0x6), region = 117 }
 0x19e   :  { %470 = vsyncpa [#allocation3], 1 }
 0x19f   :  { %472 = vsyncpa [#allocation3 + $0x1], 1 }
 0x1a0   :  { %473 = vsyncpa [#allocation5], 1 }
 0x1a1   :  { %475 = vsyncpa [#allocation5 + $0x1], 1 }

</bundles_post_ra>
